<compile_context>
chip_gen: v7x
topology: tpu7x:2x2x1
jax: 0.10.0
libtpu: 0.0.40
codegen_flags: <defaults>
</compile_context>

<pallas_src>
import functools
import math

import jax
import jax.numpy as jnp
from jax.experimental import pallas as pl
from jax.experimental.pallas import tpu as pltpu

# --- quantizer config (4-bit packing, matching the packed-uint8 layout) ---
N_BITS = 4                      # 2 <= n_bits <= 8
SIZE_SCALE = 8 // N_BITS        # codes packed per uint8 byte
MASK = (1 << N_BITS) - 1


def _dequant_kernel(x_ref, scale_ref, bias_ref, o_ref, *, strided: bool):
    """Unpack packed uint8 codes and dequantize one (c0_tile, r_tile) block.

    x_ref     : (c0_tile, r_tile)              uint8   packed byte codes
    scale_ref : (SIZE_SCALE, c0_tile, 1)       float32 delta, de-interleaved
    bias_ref  : (SIZE_SCALE, c0_tile, 1)       float32 zp*delta, de-interleaved
    o_ref     : (c0_tile*SIZE_SCALE, r_tile)   out dtype (float32 by default)
    """
    # Widen the unsigned bytes (zero-extend); values are 0..255 so the int32
    # right shift stays logical, matching torch's uint8 unpack.
    x = x_ref[...].astype(jnp.int32)                        # (c0_t, r_t)
    c0_t, r_t = x.shape

    if strided:
        # Per-sub-code strided sublane store: output row oc = c*SIZE_SCALE + s.
        # No interleave relayout, no large VMEM intermediates.
        for s in range(SIZE_SCALE):                          # static unroll
            w = ((x >> (s * N_BITS)) & MASK).astype(jnp.float32)
            val = w * scale_ref[s] - bias_ref[s]             # == (w - zp) * delta
            o_ref[pl.ds(s, c0_t, stride=SIZE_SCALE), :] = val.astype(o_ref.dtype)
    else:
        # Fallback: interleave the already-dequantized parts (only the final
        # out-dtype values go through the stack+reshape relayout).
        parts = []
        for s in range(SIZE_SCALE):
            w = ((x >> (s * N_BITS)) & MASK).astype(jnp.float32)
            parts.append(w * scale_ref[s] - bias_ref[s])
        w_all = jnp.stack(parts, axis=1).reshape(c0_t * SIZE_SCALE, r_t)
        o_ref[...] = w_all.astype(o_ref.dtype)


def _pick_tile(dim, pref, align):
    """Largest `align`-multiple tile <= pref; full-extent block if dim is small."""
    if dim <= pref:
        return dim                      # full-extent block is always legal
    t = (pref // align) * align
    return t if t > 0 else dim


def _vmem_capacity_bytes():
    try:
        return int(pltpu.get_tpu_info().vmem_capacity_bytes)
    except Exception:
        return 64 * 1024 * 1024         # conservative (v7x per-TC)


def _default_tiling():
    """(c0_tile_pref, r_tile_pref, vmem_limit_bytes) gated on chip VMEM."""
    if _vmem_capacity_bytes() >= 100 * 1024 * 1024:          # v5e / v6e (128 MiB)
        return 256, 4096, 64 * 1024 * 1024
    return 256, 2048, 32 * 1024 * 1024                       # v7x (64 MiB)


def _dequantize_2d(x_flat, delta_flat, zp_flat, *, out_dtype, c0_tile_pref,
                   r_tile_pref, vmem_limit_bytes, strided):
    """pallas_call on flattened (c0, r) packed codes; params are (oc,) float32."""
    c0, r = x_flat.shape
    oc = c0 * SIZE_SCALE

    # Pre-fused, de-interleaved params: scale[s, c] = delta[c*S + s],
    # bias[s, c] = (zp*delta)[c*S + s]; dequant is then w*scale - bias.
    scale = delta_flat.reshape(c0, SIZE_SCALE).T[:, :, None]            # (S, c0, 1)
    bias = (zp_flat * delta_flat).reshape(c0, SIZE_SCALE).T[:, :, None]  # (S, c0, 1)

    c0_tile = _pick_tile(c0, c0_tile_pref, 32)   # uint8 native (32,128) tiling
    r_tile = _pick_tile(r, r_tile_pref, 128)     # lane-dense, unmasked stores
    oc_tile = c0_tile * SIZE_SCALE
    grid = (pl.cdiv(c0, c0_tile), pl.cdiv(r, r_tile))

    out_itemsize = jnp.dtype(out_dtype).itemsize
    cost = pl.CostEstimate(
        flops=3 * oc * r,
        transcendentals=0,
        bytes_accessed=c0 * r + oc * r * out_itemsize + 8 * oc,
    )

    kernel = functools.partial(_dequant_kernel, strided=strided)
    return pl.pallas_call(
        kernel,
        out_shape=jax.ShapeDtypeStruct((oc, r), out_dtype),
        grid=grid,
        in_specs=[
            pl.BlockSpec((c0_tile, r_tile), lambda i, j: (i, j)),
            # index_map ignores j -> params DMA'd once per i (j is innermost).
            pl.BlockSpec((SIZE_SCALE, c0_tile, 1), lambda i, j: (0, i, 0)),
            pl.BlockSpec((SIZE_SCALE, c0_tile, 1), lambda i, j: (0, i, 0)),
        ],
        out_specs=pl.BlockSpec((oc_tile, r_tile), lambda i, j: (i, j)),
        compiler_params=pltpu.CompilerParams(
            dimension_semantics=("parallel", "parallel"),
            vmem_limit_bytes=vmem_limit_bytes,
        ),
        cost_estimate=cost,
    )(x_flat, scale, bias)


_STRIDED_STORE_OK = None


def _strided_store_supported():
    """One-time tiny probe; falls back to stack+reshape if strided vst rejects."""
    global _STRIDED_STORE_OK
    if _STRIDED_STORE_OK is None:
        try:
            c0, r = 8, 128
            x = jnp.arange(c0 * r, dtype=jnp.int32).astype(jnp.uint8).reshape(c0, r)
            d = jnp.ones((c0 * SIZE_SCALE,), jnp.float32)
            z = jnp.zeros((c0 * SIZE_SCALE,), jnp.float32)
            jax.block_until_ready(
                _dequantize_2d(x, d, z, out_dtype=jnp.float32,
                               c0_tile_pref=256, r_tile_pref=2048,
                               vmem_limit_bytes=32 * 1024 * 1024, strided=True))
            _STRIDED_STORE_OK = True
        except Exception:
            _STRIDED_STORE_OK = False
    return _STRIDED_STORE_OK


def simple_dequantize(x_int_pack8, delta, zero_point, ori_shape, *,
                      out_dtype=jnp.float32, c0_tile_pref=None, r_tile_pref=None,
                      interleave="auto"):
    """JAX wrapper mirroring SimpleDequantizer.forward.

    out_dtype=jnp.bfloat16 halves the dominant HBM write; default float32
    matches the torch reference exactly.
    """
    c0 = int(ori_shape[0])
    r = int(math.prod(int(d) for d in ori_shape[1:]))
    oc = c0 * SIZE_SCALE

    def_c0, def_r, vmem_limit = _default_tiling()
    c0_tile_pref = def_c0 if c0_tile_pref is None else c0_tile_pref
    r_tile_pref = def_r if r_tile_pref is None else r_tile_pref

    if interleave == "auto":
        strided = _strided_store_supported()
    else:
        strided = (interleave == "strided")

    # Free reshapes only: packed uint8 codes stay uint8 all the way to the kernel.
    x_flat = x_int_pack8.reshape(c0, r)
    delta_flat = delta.reshape(oc).astype(jnp.float32)
    zp_flat = zero_point.reshape(oc).astype(jnp.float32)

    out_flat = _dequantize_2d(
        x_flat, delta_flat, zp_flat, out_dtype=out_dtype,
        c0_tile_pref=c0_tile_pref, r_tile_pref=r_tile_pref,
        vmem_limit_bytes=vmem_limit, strided=strided)

    return out_flat.reshape((oc,) + tuple(int(d) for d in ori_shape[1:]))


def _reference(x_int_pack8, delta, zero_point, ori_shape):
    """Pure-JAX reference matching the PyTorch forward."""
    c0 = int(ori_shape[0])
    x_flat = x_int_pack8.reshape(c0, -1).astype(jnp.int32)
    shifts = jnp.arange(0, 8, N_BITS, dtype=jnp.int32)            # == self.gap
    w = (x_flat[:, None, :] >> shifts[None, :, None]) & MASK      # (c0, S, R)
    w = w.reshape(c0 * SIZE_SCALE, -1).astype(jnp.float32)
    out = (w - zero_point.reshape(-1, 1)) * delta.reshape(-1, 1)
    return out.reshape((c0 * SIZE_SCALE,) + tuple(int(d) for d in ori_shape[1:]))


if __name__ == "__main__":
    key = jax.random.PRNGKey(0)

    cases = [
        # small single-block 4-D case (grid = (1, 1), full-extent blocks)
        dict(ori_shape=(8, 4, 4, 8)),
        # small gridded 4-D case: explicit tile prefs -> grid = (2, 2)
        dict(ori_shape=(64, 16, 4, 4), c0_tile_pref=32, r_tile_pref=128),
        # 2-D (linear-layer) weight case
        dict(ori_shape=(16, 256)),
    ]

    for idx, case in enumerate(cases):
        ori_shape = case["ori_shape"]
        oc = ori_shape[0] * SIZE_SCALE
        k_x, k_d, k_z = jax.random.split(jax.random.fold_in(key, idx), 3)

        # deterministic packed uint8 codes and randn parameters (as in __init__)
        x_int_pack8 = jax.random.randint(
            k_x, ori_shape, minval=0, maxval=256, dtype=jnp.int32
        ).astype(jnp.uint8)
        param_shape = (oc, 1, 1, 1) if len(ori_shape) == 4 else (oc, 1)
        delta = jax.random.normal(k_d, param_shape, dtype=jnp.float32)
        zero_point = jax.random.normal(k_z, param_shape, dtype=jnp.float32)

        tile_kw = {k: v for k, v in case.items() if k != "ori_shape"}
        out = simple_dequantize(x_int_pack8, delta, zero_point, ori_shape, **tile_kw)
        out = jax.block_until_ready(out)

        ref = _reference(x_int_pack8, delta, zero_point, ori_shape)
        assert out.shape == (oc,) + tuple(ori_shape[1:]), out.shape
        assert out.dtype == jnp.float32
        assert jnp.allclose(out, ref, atol=1e-4, rtol=1e-5), f"mismatch case {idx}"

    print("KERNEL_OK")
</pallas_src>

<mosaic_0001>
module attributes {stable_mosaic.version = 11 : i64} {
  func.func @_dequant_kernel(%arg0: i32, %arg1: i32, %arg2: memref<8x128xi8, #tpu.memory_space<vmem>>, %arg3: memref<2x8x1xf32, #tpu.memory_space<vmem>>, %arg4: memref<2x8x1xf32, #tpu.memory_space<vmem>>, %arg5: memref<16x128xf32, #tpu.memory_space<vmem>>) attributes {dimension_semantics = [#tpu.dimension_semantics<parallel>, #tpu.dimension_semantics<parallel>], iteration_bounds = array<i64: 1, 1>, scalar_prefetch = 0 : i64, scratch_operands = 0 : i64, tpu.core_type = #tpu.core_type<tc>, window_params = [{transform_indices = @transform_0, window_bounds = array<i64: 8, 128>}, {transform_indices = @transform_1, window_bounds = array<i64: 2, 8, 1>}, {transform_indices = @transform_2, window_bounds = array<i64: 2, 8, 1>}, {transform_indices = @transform_3, window_bounds = array<i64: 16, 128>}]} {
    %c0 = arith.constant 0 : index
    %c0_0 = arith.constant 0 : index
    %0 = vector.load %arg2[%c0, %c0_0] : memref<8x128xi8, #tpu.memory_space<vmem>>, vector<8x128xi8>
    %1 = arith.extui %0 : vector<8x128xi8> to vector<8x128xi32>
    %c0_i32 = arith.constant 0 : i32
    %2 = vector.broadcast %c0_i32 : i32 to vector<8x128xi32>
    %3 = arith.shrsi %1, %2 : vector<8x128xi32>
    %c15_i32 = arith.constant 15 : i32
    %4 = vector.broadcast %c15_i32 : i32 to vector<8x128xi32>
    %5 = arith.andi %3, %4 : vector<8x128xi32>
    %6 = arith.sitofp %5 : vector<8x128xi32> to vector<8x128xf32>
    %c0_1 = arith.constant 0 : index
    %c0_2 = arith.constant 0 : index
    %c0_3 = arith.constant 0 : index
    %7 = vector.load %arg3[%c0_1, %c0_2, %c0_3] : memref<2x8x1xf32, #tpu.memory_space<vmem>>, vector<1x8x1xf32>
    %8 = vector.shape_cast %7 : vector<1x8x1xf32> to vector<8x1xf32>
    %9 = vector.broadcast %8 : vector<8x1xf32> to vector<8x128xf32>
    %10 = arith.mulf %6, %9 : vector<8x128xf32>
    %c0_4 = arith.constant 0 : index
    %c0_5 = arith.constant 0 : index
    %c0_6 = arith.constant 0 : index
    %11 = vector.load %arg4[%c0_4, %c0_5, %c0_6] : memref<2x8x1xf32, #tpu.memory_space<vmem>>, vector<1x8x1xf32>
    %12 = vector.shape_cast %11 : vector<1x8x1xf32> to vector<8x1xf32>
    %13 = vector.broadcast %12 : vector<8x1xf32> to vector<8x128xf32>
    %14 = arith.subf %10, %13 : vector<8x128xf32>
    %c0_7 = arith.constant 0 : index
    %c0_8 = arith.constant 0 : index
    %15 = tpu.strided_load %arg5[%c0_7, %c0_8] {strides = array<i32: 2, 1>} : memref<16x128xf32, #tpu.memory_space<vmem>>, vector<8x128xf32>
    tpu.strided_store %arg5[%c0_7, %c0_8], %14 {strides = array<i32: 2, 1>} : memref<16x128xf32, #tpu.memory_space<vmem>>, vector<8x128xf32>
    %c4_i32 = arith.constant 4 : i32
    %16 = vector.broadcast %c4_i32 : i32 to vector<8x128xi32>
    %17 = arith.shrsi %1, %16 : vector<8x128xi32>
    %c15_i32_9 = arith.constant 15 : i32
    %18 = vector.broadcast %c15_i32_9 : i32 to vector<8x128xi32>
    %19 = arith.andi %17, %18 : vector<8x128xi32>
    %20 = arith.sitofp %19 : vector<8x128xi32> to vector<8x128xf32>
    %c1 = arith.constant 1 : index
    %c0_10 = arith.constant 0 : index
    %c0_11 = arith.constant 0 : index
    %21 = vector.load %arg3[%c1, %c0_10, %c0_11] : memref<2x8x1xf32, #tpu.memory_space<vmem>>, vector<1x8x1xf32>
    %22 = vector.shape_cast %21 : vector<1x8x1xf32> to vector<8x1xf32>
    %23 = vector.broadcast %22 : vector<8x1xf32> to vector<8x128xf32>
    %24 = arith.mulf %20, %23 : vector<8x128xf32>
    %c1_12 = arith.constant 1 : index
    %c0_13 = arith.constant 0 : index
    %c0_14 = arith.constant 0 : index
    %25 = vector.load %arg4[%c1_12, %c0_13, %c0_14] : memref<2x8x1xf32, #tpu.memory_space<vmem>>, vector<1x8x1xf32>
    %26 = vector.shape_cast %25 : vector<1x8x1xf32> to vector<8x1xf32>
    %27 = vector.broadcast %26 : vector<8x1xf32> to vector<8x128xf32>
    %28 = arith.subf %24, %27 : vector<8x128xf32>
    %c1_15 = arith.constant 1 : index
    %c0_16 = arith.constant 0 : index
    %29 = tpu.strided_load %arg5[%c1_15, %c0_16] {strides = array<i32: 2, 1>} : memref<16x128xf32, #tpu.memory_space<vmem>>, vector<8x128xf32>
    tpu.strided_store %arg5[%c1_15, %c0_16], %28 {strides = array<i32: 2, 1>} : memref<16x128xf32, #tpu.memory_space<vmem>>, vector<8x128xf32>
    return
  }
  func.func @transform_0(%arg0: i32, %arg1: i32) -> (i32, i32) {
    %c0_i32 = arith.constant 0 : i32
    return %arg0, %arg1 : i32, i32
  }
  func.func @transform_1(%arg0: i32, %arg1: i32) -> (i32, i32, i32) {
    %c0_i32 = arith.constant 0 : i32
    %c0_i32_0 = arith.constant 0 : i32
    %c0_i32_1 = arith.constant 0 : i32
    return %c0_i32, %arg0, %c0_i32_0 : i32, i32, i32
  }
  func.func @transform_2(%arg0: i32, %arg1: i32) -> (i32, i32, i32) {
    %c0_i32 = arith.constant 0 : i32
    %c0_i32_0 = arith.constant 0 : i32
    %c0_i32_1 = arith.constant 0 : i32
    return %c0_i32, %arg0, %c0_i32_0 : i32, i32, i32
  }
  func.func @transform_3(%arg0: i32, %arg1: i32) -> (i32, i32) {
    %c0_i32 = arith.constant 0 : i32
    return %arg0, %arg1 : i32, i32
  }
}

module attributes {stable_mosaic.version = 11 : i64} {
  func.func @_dequant_kernel(%arg0: i32, %arg1: i32, %arg2: memref<8x128xi8, #tpu.memory_space<vmem>>, %arg3: memref<2x8x1xf32, #tpu.memory_space<vmem>>, %arg4: memref<2x8x1xf32, #tpu.memory_space<vmem>>, %arg5: memref<16x128xf32, #tpu.memory_space<vmem>>) attributes {dimension_semantics = [#tpu.dimension_semantics<parallel>, #tpu.dimension_semantics<parallel>], iteration_bounds = array<i64: 1, 1>, scalar_prefetch = 0 : i64, scratch_operands = 0 : i64, tpu.core_type = #tpu.core_type<tc>, window_params = [{transform_indices = @transform_0, window_bounds = array<i64: 8, 128>}, {transform_indices = @transform_1, window_bounds = array<i64: 2, 8, 1>}, {transform_indices = @transform_2, window_bounds = array<i64: 2, 8, 1>}, {transform_indices = @transform_3, window_bounds = array<i64: 16, 128>}]} {
    %c0 = arith.constant 0 : index
    %c0_0 = arith.constant 0 : index
    %0 = vector.load %arg2[%c0, %c0_0] : memref<8x128xi8, #tpu.memory_space<vmem>>, vector<8x128xi8>
    %1 = arith.extui %0 : vector<8x128xi8> to vector<8x128xi32>
    %c0_i32 = arith.constant 0 : i32
    %2 = vector.broadcast %c0_i32 : i32 to vector<8x128xi32>
    %3 = arith.shrsi %1, %2 : vector<8x128xi32>
    %c15_i32 = arith.constant 15 : i32
    %4 = vector.broadcast %c15_i32 : i32 to vector<8x128xi32>
    %5 = arith.andi %3, %4 : vector<8x128xi32>
    %6 = arith.sitofp %5 : vector<8x128xi32> to vector<8x128xf32>
    %c0_1 = arith.constant 0 : index
    %c0_2 = arith.constant 0 : index
    %c0_3 = arith.constant 0 : index
    %7 = vector.load %arg3[%c0_1, %c0_2, %c0_3] : memref<2x8x1xf32, #tpu.memory_space<vmem>>, vector<1x8x1xf32>
    %8 = vector.shape_cast %7 : vector<1x8x1xf32> to vector<8x1xf32>
    %9 = vector.broadcast %8 : vector<8x1xf32> to vector<8x128xf32>
    %10 = arith.mulf %6, %9 : vector<8x128xf32>
    %c0_4 = arith.constant 0 : index
    %c0_5 = arith.constant 0 : index
    %c0_6 = arith.constant 0 : index
    %11 = vector.load %arg4[%c0_4, %c0_5, %c0_6] : memref<2x8x1xf32, #tpu.memory_space<vmem>>, vector<1x8x1xf32>
    %12 = vector.shape_cast %11 : vector<1x8x1xf32> to vector<8x1xf32>
    %13 = vector.broadcast %12 : vector<8x1xf32> to vector<8x128xf32>
    %14 = arith.subf %10, %13 : vector<8x128xf32>
    %c4_i32 = arith.constant 4 : i32
    %15 = vector.broadcast %c4_i32 : i32 to vector<8x128xi32>
    %16 = arith.shrsi %1, %15 : vector<8x128xi32>
    %c15_i32_7 = arith.constant 15 : i32
    %17 = vector.broadcast %c15_i32_7 : i32 to vector<8x128xi32>
    %18 = arith.andi %16, %17 : vector<8x128xi32>
    %19 = arith.sitofp %18 : vector<8x128xi32> to vector<8x128xf32>
    %c1 = arith.constant 1 : index
    %c0_8 = arith.constant 0 : index
    %c0_9 = arith.constant 0 : index
    %20 = vector.load %arg3[%c1, %c0_8, %c0_9] : memref<2x8x1xf32, #tpu.memory_space<vmem>>, vector<1x8x1xf32>
    %21 = vector.shape_cast %20 : vector<1x8x1xf32> to vector<8x1xf32>
    %22 = vector.broadcast %21 : vector<8x1xf32> to vector<8x128xf32>
    %23 = arith.mulf %19, %22 : vector<8x128xf32>
    %c1_10 = arith.constant 1 : index
    %c0_11 = arith.constant 0 : index
    %c0_12 = arith.constant 0 : index
    %24 = vector.load %arg4[%c1_10, %c0_11, %c0_12] : memref<2x8x1xf32, #tpu.memory_space<vmem>>, vector<1x8x1xf32>
    %25 = vector.shape_cast %24 : vector<1x8x1xf32> to vector<8x1xf32>
    %26 = vector.broadcast %25 : vector<8x1xf32> to vector<8x128xf32>
    %27 = arith.subf %23, %26 : vector<8x128xf32>
    %28 = vector.shape_cast %14 : vector<8x128xf32> to vector<8x1x128xf32>
    %29 = vector.shape_cast %27 : vector<8x128xf32> to vector<8x1x128xf32>
    %30 = tpu.concatenate %28, %29 in 1 : vector<8x1x128xf32>, vector<8x1x128xf32> -> vector<8x2x128xf32>
    %31 = vector.shape_cast %30 : vector<8x2x128xf32> to vector<16x128xf32>
    %c0_13 = arith.constant 0 : index
    %c0_14 = arith.constant 0 : index
    %32 = vector.load %arg5[%c0_13, %c0_14] : memref<16x128xf32, #tpu.memory_space<vmem>>, vector<16x128xf32>
    tpu.vector_store %arg5[%c0_13, %c0_14], %31 {strides = array<i32>} : memref<16x128xf32, #tpu.memory_space<vmem>>, vector<16x128xf32>,
    return
  }
  func.func @transform_0(%arg0: i32, %arg1: i32) -> (i32, i32) {
    %c0_i32 = arith.constant 0 : i32
    return %arg0, %arg1 : i32, i32
  }
  func.func @transform_1(%arg0: i32, %arg1: i32) -> (i32, i32, i32) {
    %c0_i32 = arith.constant 0 : i32
    %c0_i32_0 = arith.constant 0 : i32
    %c0_i32_1 = arith.constant 0 : i32
    return %c0_i32, %arg0, %c0_i32_0 : i32, i32, i32
  }
  func.func @transform_2(%arg0: i32, %arg1: i32) -> (i32, i32, i32) {
    %c0_i32 = arith.constant 0 : i32
    %c0_i32_0 = arith.constant 0 : i32
    %c0_i32_1 = arith.constant 0 : i32
    return %c0_i32, %arg0, %c0_i32_0 : i32, i32, i32
  }
  func.func @transform_3(%arg0: i32, %arg1: i32) -> (i32, i32) {
    %c0_i32 = arith.constant 0 : i32
    return %arg0, %arg1 : i32, i32
  }
}

</mosaic_0001>

<bundles_post_ra>
// kernel: tpu_custom_call.1
= control target key start
LH: loop header
LB: loop body
LE: loop exit
PB: predicated region body
PF: predicated region fallthrough
CT: control target
= control target key end

     0   :  { %v104_v2 = vmov 0   ;;  %s155_s0 = inlined_call_operand.vmem [shape: u8[8,128], index: 0, kind: input, shape index: {}]   ;;  %s156_s1 = inlined_call_operand.vmem [shape: f32[2,8,1], index: 1, kind: input, shape index: {}]   ;;  %s157_s2 = inlined_call_operand.vmem [shape: f32[2,8,1], index: 2, kind: input, shape index: {}]   ;;  %s158_s3 = inlined_call_operand.hbm [shape: f32[16,128], index: 3, kind: output, shape index: {}]  }
   0x1   :  { %v27_v0 = vld [vmem:[%s157_s2] sm:$0xff]  ;;  %79 = vset.pattern.permute.xlu1 %v104_v2  ;;  %78 = vset.pattern.permute.xlu0 %v104_v2 }
   0x2   :  { %v20_v1 = vld [vmem:[%s156_s1] sm:$0xff] }
   0x3   :  { %8 = vsyncpa [#allocation3], 0  ;;  %30 = vperm.xlu1 %79, %v27_v0   ;;  %23 = vperm.xlu0 %78, %v20_v1   ;;  %v73_v3 = vld [vmem:[%s157_s2 + $0x8] sm:$0xff]  ;;  %v15_v5 = vld [vmem:[%s155_s0] sm:$0x3]  ;;  %s105_s2 = smov [#allocation2]  }
   0x4   :  { %v72_v4 = vld [vmem:[%s156_s1 + $0x8] sm:$0xff]  ;;  %v16_v6 = vunpack.c.0.s8 %v15_v5  ;;  %s61_s22 = sshll.u32 %s105_s2, 4  ;;  %s62_s22 = int_to_ptr.vmem [resolvable:$true] %s61_s22 }
   0x5   :  { %s80_s0 = scalar_lea.vmem %s62_s22, 256  ;;  %p85_p1 = scmp.lt.s32.totalorder %s62_s22, %s62_s22 }
   0x6   :  { %v17_v7 = vand.u32 255, %v16_v6  ;;  %p81_p0 = scmp.ne.s32.totalorder %s62_s22, %s80_s0  ;;  %p86_p2 = scmp.lt.s32.totalorder %s80_s0, %s80_s0 }
   0x7   :  { %50 = vperm.xlu1 %79, %v73_v3   ;;  %42 = vperm.xlu0 %78, %v72_v4  }
   0x8   :  { %v18_v8 = vand.u32 15, %v17_v7  ;;  %v35_v9 = vshra.s32 %v17_v7, 4  ;;  %p87_p3 = por %p86_p2, %p85_p1 }
   0xa   :  { %v19_v10 = vcvt.s32.f32 %v18_v8  ;;  %v36_v11 = vand.u32 15, %v35_v9  ;;  %p88_p4 = pnand %p87_p3, %p81_p0 }
   0xc   :  { %v37_v15 = vcvt.s32.f32 %v36_v11 }
  0x82   :  { %v31_v12 = vpop.permute.xlu1 %30  ;;  %v24_v13 = vpop.permute.xlu0 %23 }
  0x83   :  { %v26_v14 = vmul.f32 %v24_v13, %v19_v10 }
  0x85   :  { %v33_v16 = vsub.f32 %v26_v14, %v31_v12 }
  0x86   :  { %v43_v17 = vpop.permute.xlu0 %42  ;;  %v51_v19 = vpop.permute.xlu1 %50 }
  0x87   :  { %34 = vst [vmem:[#allocation2] ss:$2 sm:$0xff] %v33_v16  ;;  %v45_v18 = vmul.f32 %v43_v17, %v37_v15 }
  0x89   :  { %v53_v20 = vsub.f32 %v45_v18, %v51_v19 }
  0x8b   :  { %55 = vst [vmem:[#allocation2 + $0x1] ss:$2 sm:$0xff] %v53_v20 }
  0x8c   :  { %91 = shalt.err (!%p88_p4)
}
  0x8d   :  { %s92_s24 = scalar_lea.hbm %s158_s3, 256 }
  0x8e   :  { %p93_p5 = scmp.ne.s32.totalorder %s158_s3, %s92_s24  ;;  %p96_p6 = scmp.lt.u32.totalorder %s92_s24, %s158_s3 }
  0x90   :  { %p98_p7 = pnand %p96_p6, %p93_p5 }
  0x92   :  { %101 = shalt.err (!%p98_p7)
}
  0x93   :  { %s106_s29 = smov 128   ;;  %s107_s30 = smov 8  }
  0x94   :  { %67 = dma.vmem_to_hbm [thread:$0]  %s62_s22, 256, %s158_s3, [#allocation3], %s106_s29, %s106_s29, %s107_s30  }
  0x95   :  { %102 = dma.done.wait [#allocation3], 256  }
  0x96   :  { %103 = vsyncadd [#allocation3], 4294967040 }
  0x97   :  { %71 = vsyncpa [#allocation3], 1 }

// kernel: tpu_custom_call.1
= control target key start
LH: loop header
LB: loop body
LE: loop exit
PB: predicated region body
PF: predicated region fallthrough
CT: control target
= control target key end

     0   :  { %v306_v2 = vmov 0   ;;  %s367_s0 = inlined_call_operand.vmem [shape: u8[8,128], index: 0, kind: input, shape index: {}]   ;;  %s368_s1 = inlined_call_operand.vmem [shape: f32[2,8,1], index: 1, kind: input, shape index: {}]   ;;  %s369_s2 = inlined_call_operand.vmem [shape: f32[2,8,1], index: 2, kind: input, shape index: {}]   ;;  %s370_s3 = inlined_call_operand.hbm [shape: f32[16,128], index: 3, kind: output, shape index: {}]  }
   0x1   :  { %v273_v0 = vld [vmem:[%s369_s2 + $0x8] sm:$0xff]  ;;  %281 = vset.pattern.permute.xlu1 %v306_v2  ;;  %280 = vset.pattern.permute.xlu0 %v306_v2 }
   0x2   :  { %v272_v1 = vld [vmem:[%s368_s1 + $0x8] sm:$0xff] }
   0x3   :  { %8 = vsyncpa [#allocation3], 0  ;;  %49 = vperm.xlu1 %281, %v273_v0   ;;  %41 = vperm.xlu0 %280, %v272_v1   ;;  %v27_v3 = vld [vmem:[%s369_s2] sm:$0xff]  ;;  %v307_v9 = vmov 1966171168   ;;  %v58_v11 = vlaneseq  ;;  %vm201_vm0 = vcmask 1040384  }
   0x4   :  { %v20_v4 = vld [vmem:[%s368_s1] sm:$0xff]  ;;  %v56_v10 = vunpack.c.l.s4 %v307_v9  ;;  %v308_v24 = vmov 1983009808  }
   0x5   :  { %v15_v5 = vld [vmem:[%s367_s0] sm:$0x3]  ;;  %v59_v14 = vshrl.u32 %v58_v11, 7  ;;  %v221_v25 = vunpack.c.l.s4 %v308_v24  ;;  %s309_s0 = smov [#allocation2]  }
   0x6   :  { %v16_v6 = vunpack.c.0.s8 %v15_v5  ;;  %v57_v13 = vunpack.c.0.s8 %v56_v10  ;;  %s261_s1 = sshll.u32 %s309_s0, 4  ;;  %s262_s1 = int_to_ptr.vmem [resolvable:$true] %s261_s1 }
   0x7   :  { %30 = vperm.xlu1 %281, %v27_v3   ;;  %23 = vperm.xlu0 %280, %v20_v4   ;;  %v222_v34 = vunpack.c.0.s8 %v221_v25  ;;  %v163_v35 = vsub.s32 0, %v59_v14  ;;  %s282_s2 = scalar_lea.vmem %s262_s1, 256  ;;  %p287_p1 = scmp.lt.s32.totalorder %s262_s1, %s262_s1 }
   0x8   :  { %v17_v7 = vand.u32 255, %v16_v6  ;;  %v60_v19 = vsub.s32 %v57_v13, %v59_v14  ;;  %p283_p0 = scmp.ne.s32.totalorder %s262_s1, %s282_s2  ;;  %p288_p2 = scmp.lt.s32.totalorder %s282_s2, %s282_s2 }
   0x9   :  { %v225_v46 = vsub.s32 %v222_v34, %v59_v14 }
   0xa   :  { %v34_v8 = vshra.s32 %v17_v7, 4  ;;  %v18_v16 = vand.u32 15, %v17_v7  ;;  %p289_p3 = por %p288_p2, %p287_p1 }
   0xc   :  { %v35_v12 = vand.u32 15, %v34_v8  ;;  %v19_v21 = vcvt.s32.f32 %v18_v16  ;;  %p290_p4 = pnand %p289_p3, %p283_p0 }
   0xe   :  { %v36_v15 = vcvt.s32.f32 %v35_v12 }
  0x82   :  { %v50_v17 = vpop.permute.xlu1 %49  ;;  %v42_v18 = vpop.permute.xlu0 %41 }
  0x83   :  { %v44_v20 = vmul.f32 %v42_v18, %v36_v15 }
  0x85   :  { %v52_v22 = vsub.f32 %v44_v20, %v50_v17 }
  0x86   :  { %v24_v23 = vpop.permute.xlu0 %23  ;;  %v31_v29 = vpop.permute.xlu1 %30 }
  0x87   :  { %v112_v26 = vcombine.high %v52_v22, %v52_v22  ;;  %v119_v27 = vrot.slane %v52_v22, %v60_v19  ;;  %v26_v28 = vmul.f32 %v24_v23, %v19_v21 }
  0x89   :  { %v126_v30 = vrot.slane %v112_v26, %v60_v19  ;;  %v127_v31 = vcombine.high %v119_v27, %v119_v27  ;;  %v135_v32 = vrot.slane %v119_v27, %v60_v19  ;;  %v33_v33 = vsub.f32 %v26_v28, %v31_v29 }
  0x8b   :  { %v128_v36 = vcombine.high %v126_v30, %v126_v30  ;;  %v142_v37 = vrot.slane %v126_v30, %v60_v19  ;;  %v149_v38 = vrot.slane %v127_v31, %v60_v19  ;;  %v54_v39 = vcombine.high %v33_v33, %v33_v33 }
  0x8c   :  { %v61_v40 = vrot.slane %v33_v33, %v60_v19  ;;  %v157_v42 = vcombine.high %v135_v32, %v135_v32  ;;  %v164_v49 = vrot.slane %v135_v32, %v163_v35 }
  0x8d   :  { %v156_v41 = vrot.slane %v128_v36, %v60_v19  ;;  %v159_v43 = vcombine.high %v149_v38, %v149_v38  ;;  %v68_v44 = vrot.slane %v54_v39, %v60_v19  ;;  %v158_v47 = vcombine.high %v142_v37, %v142_v37 }
  0x8e   :  { %v69_v45 = vcombine.high %v61_v40, %v61_v40  ;;  %v168_v50 = vrot.slane %v149_v38, %v163_v35  ;;  %v77_v52 = vrot.slane %v61_v40, %v60_v19  ;;  %v172_v55 = vrot.slane %v157_v42, %v163_v35 }
  0x8f   :  { %v160_v48 = vcombine.high %v156_v41, %v156_v41  ;;  %v70_v51 = vcombine.high %v68_v44, %v68_v44  ;;  %v84_v53 = vrot.slane %v68_v44, %v60_v19  ;;  %v176_v56 = vrot.slane %v159_v43, %v163_v35 }
  0x90   :  { %v91_v54 = vrot.slane %v69_v45, %v60_v19  ;;  %v180_v57 = vrot.slane %v142_v37, %v163_v35  ;;  %v184_v58 = vrot.slane %v156_v41, %v163_v35  ;;  %v99_v60 = vcombine.high %v77_v52, %v77_v52 }
  0x91   :  { %v98_v59 = vrot.slane %v70_v51, %v60_v19  ;;  %v100_v61 = vcombine.high %v84_v53, %v84_v53  ;;  %v188_v63 = vrot.slane %v158_v47, %v163_v35  ;;  %v192_v0 = vrot.slane %v160_v48, %v163_v35 }
  0x92   :  { %v101_v62 = vcombine.high %v91_v54, %v91_v54  ;;  %v202_v1 = vsel %vm201_vm0, %v77_v52, %v164_v49  ;;  %v203_v2 = vsel %vm201_vm0, %v91_v54, %v168_v50  ;;  %v204_v4 = vsel %vm201_vm0, %v99_v60, %v172_v55 }
  0x93   :  { %v102_v3 = vcombine.high %v98_v59, %v98_v59  ;;  %v218_v5 = vcombine.low %v202_v1, %v203_v2  ;;  %v206_v7 = vsel %vm201_vm0, %v84_v53, %v180_v57  ;;  %v207_v8 = vsel %vm201_vm0, %v98_v59, %v184_v58 }
  0x94   :  { %v205_v6 = vsel %vm201_vm0, %v101_v62, %v176_v56  ;;  %v208_v10 = vsel %vm201_vm0, %v100_v61, %v188_v63  ;;  %v235_v12 = vcombine.low %v206_v7, %v207_v8 }
  0x95   :  { %v219_v9 = vcombine.low %v204_v4, %v205_v6  ;;  %v209_v11 = vsel %vm201_vm0, %v102_v3, %v192_v0  ;;  %v226_v13 = vrot.slane %v218_v5, %v225_v46 }
  0x96   :  { %v236_v15 = vcombine.low %v208_v10, %v209_v11  ;;  %v243_v17 = vrot.slane %v235_v12, %v225_v46 }
  0x97   :  { %v233_v14 = vrot.slane %v219_v9, %v225_v46 }
  0x98   :  { %v250_v18 = vrot.slane %v236_v15, %v225_v46 }
  0x99   :  { %v234_v16 = vcombine.low %v226_v13, %v233_v14 }
  0x9a   :  { %v251_v19 = vcombine.low %v243_v17, %v250_v18 }
  0x9b   :  { %254 = vst [vmem:[#allocation2] sm:$0xff] %v234_v16 }
  0x9c   :  { %255 = vst [vmem:[#allocation2 + $0x8] sm:$0xff] %v251_v19 }
  0x9d   :  { %293 = shalt.err (!%p290_p4)
}
  0x9e   :  { %s294_s24 = scalar_lea.hbm %s370_s3, 256 }
  0x9f   :  { %p295_p5 = scmp.ne.s32.totalorder %s370_s3, %s294_s24  ;;  %p298_p6 = scmp.lt.u32.totalorder %s294_s24, %s370_s3 }
  0xa1   :  { %p300_p7 = pnand %p298_p6, %p295_p5 }
  0xa3   :  { %303 = shalt.err (!%p300_p7)
}
  0xa4   :  { %s310_s29 = smov 128   ;;  %s311_s30 = smov 8  }
  0xa5   :  { %267 = dma.vmem_to_hbm [thread:$0]  %s262_s1, 256, %s370_s3, [#allocation3], %s310_s29, %s310_s29, %s311_s30  }
  0xa6   :  { %304 = dma.done.wait [#allocation3], 256  }
  0xa7   :  { %305 = vsyncadd [#allocation3], 4294967040 }
  0xa8   :  { %271 = vsyncpa [#allocation3], 1 }

</bundles_post_ra>
